<compile_context>
chip_gen: v7x
topology: tpu7x:2x2x1
jax: 0.10.0
libtpu: 0.0.40
codegen_flags: <defaults>
</compile_context>

<pallas_src>
import jax
import jax.numpy as jnp
from jax.experimental import pallas as pl
from jax.experimental.pallas import tpu as pltpu

_LANE = 128
_ROW_ALIGN = 16  # sublane alignment that is safe for both f32 and bf16 tiles


def _make_sa_loss_kernel(tile_rows, hw, needs_mask):
    def _partial_sum(k):
        # (B, TILE_R, 128) -> (8, 128) using only vreg-wise (VALU) adds.
        return k.reshape(-1, 8, _LANE).sum(axis=0)

    def kernel(mean_ref, x_ref, o_ref):
        t = pl.program_id(0)

        x = x_ref[...].astype(jnp.float32)   # (B, 3, TILE_R, 128) cast in-kernel
        m = mean_ref[...]                    # (B, 3, 1, 1) f32
        d = x - m
        d2 = d * d
        # explicit 3-term channel sum: channels live on a major (non-tiled)
        # dim, so these are full-vreg VALU adds (no cross-sublane work).
        s = d2[:, 0] + d2[:, 1] + d2[:, 2]   # (B, TILE_R, 128)
        k = jnp.sqrt(s)                      # EUP

        if needs_mask:
            last = pl.num_programs(0) - 1

            @pl.when(t != last)
            def _store_dense():
                o_ref[...] = _partial_sum(k)[None]

            @pl.when(t == last)
            def _store_masked():
                # Zero out zero-padded / out-of-range lanes. Select (not a
                # multiplicative mask) so garbage rows from a partial edge
                # block are safe even if they produce inf/NaN.
                row = jax.lax.broadcasted_iota(jnp.int32, k.shape, 1)
                lane = jax.lax.broadcasted_iota(jnp.int32, k.shape, 2)
                flat = (t * tile_rows + row) * _LANE + lane
                km = jnp.where(flat < hw, k, 0.0)
                o_ref[...] = _partial_sum(km)[None]
        else:
            o_ref[...] = _partial_sum(k)[None]

    return kernel


def sa_loss(x, *, tile_rows=None, vmem_budget_bytes=24 * 1024 * 1024):
    """Pallas TPU implementation of Sa_Loss.forward. x: (B, 3, H, W)."""
    b, c, h, w = x.shape
    if c != 3:
        raise ValueError("Sa_Loss requires exactly 3 channels (r, g, b)")
    hw = h * w

    x3 = x.reshape(b, c, hw)  # free reshape, native dtype (no f32 HBM copy)
    # per-(batch, channel) spatial mean on the UNPADDED data; tiny f32 output
    mean = jnp.mean(x3, axis=-1, dtype=jnp.float32).reshape(b, c, 1, 1)

    # Pad the flat HW axis up to a multiple of 16*128 so the channel dim can be
    # moved off the sublane axis with a copy-free reshape to (B, 3, R, 128).
    num_rows_raw = -(-hw // _LANE)
    num_rows = -(-num_rows_raw // _ROW_ALIGN) * _ROW_ALIGN
    hw_pad = num_rows * _LANE
    if hw_pad != hw:
        # TODO(synk): the pad costs one extra HBM pass over x for ragged HW;
        # common image sizes (HW % 2048 == 0) take the copy-free path.
        x3 = jnp.pad(x3, ((0, 0), (0, 0), (0, hw_pad - hw)))
    x4 = x3.reshape(b, c, num_rows, _LANE)

    # Tile sizing: multi-MiB double-buffered blocks to amortize the per-step
    # grid overhead (budget counts both pipeline buffers of the x stream).
    itemsize = jnp.dtype(x.dtype).itemsize
    bytes_per_row = b * 3 * _LANE * itemsize  # one 128-lane row across (b, c)
    if tile_rows is None:
        tile_rows = vmem_budget_bytes // (2 * bytes_per_row)
    tile_rows = max(_ROW_ALIGN, (int(tile_rows) // _ROW_ALIGN) * _ROW_ALIGN)
    tile_rows = min(tile_rows, num_rows)

    num_tiles = -(-num_rows // tile_rows)
    needs_mask = (hw_pad != hw) or (num_rows % tile_rows != 0)

    x_stream_bytes = 2 * tile_rows * bytes_per_row  # double-buffered x blocks
    vmem_limit = max(16 * 1024 * 1024, x_stream_bytes + 8 * 1024 * 1024)

    kernel = _make_sa_loss_kernel(tile_rows, hw, needs_mask)

    partials = pl.pallas_call(
        kernel,
        out_shape=jax.ShapeDtypeStruct((num_tiles, 8, _LANE), jnp.float32),
        grid_spec=pltpu.PrefetchScalarGridSpec(
            num_scalar_prefetch=0,
            grid=(num_tiles,),
            in_specs=[
                pl.BlockSpec((b, 3, 1, 1), lambda t: (0, 0, 0, 0)),             # mean
                pl.BlockSpec((b, 3, tile_rows, _LANE), lambda t: (0, 0, t, 0)),  # x
            ],
            out_specs=pl.BlockSpec((1, 8, _LANE), lambda t: (t, 0, 0)),
        ),
        compiler_params=pltpu.CompilerParams(
            dimension_semantics=("parallel",),      # megacore split on v7x
            vmem_limit_bytes=int(vmem_limit),
        ),
    )(mean, x4)

    # tiny final reduce + mean over the true element count
    return jnp.sum(partials, dtype=jnp.float32) / jnp.float32(b * h * w)


def _reference(x):
    # pure-JAX reference mirroring the PyTorch forward
    xf = x.astype(jnp.float32)
    mean_rgb = jnp.mean(xf, axis=(2, 3), keepdims=True)
    d = xf - mean_rgb
    k = jnp.sqrt(jnp.sum(d * d, axis=1))
    return jnp.mean(k)


if __name__ == "__main__":
    key = jax.random.PRNGKey(0)
    k1, k2, k3, k4 = jax.random.split(key, 4)

    # 1) small input, default auto-sizing, single tile, padded/masked tail
    x1 = jax.random.uniform(k1, (2, 3, 16, 16), dtype=jnp.float32)
    out1 = sa_loss(x1)
    jax.block_until_ready(out1)
    ref1 = _reference(x1)
    assert jnp.allclose(out1, ref1, rtol=1e-5, atol=1e-5), (out1, ref1)

    # 2) exact multi-tile grid path (HW = 4096 -> 32 rows, 2 tiles, no mask)
    x2 = jax.random.uniform(k2, (2, 3, 64, 64), dtype=jnp.float32)
    out2 = sa_loss(x2, tile_rows=16)
    jax.block_until_ready(out2)
    ref2 = _reference(x2)
    assert jnp.allclose(out2, ref2, rtol=1e-5, atol=1e-5), (out2, ref2)

    # 3) multi-tile with ragged / padded last tile (mask only on last step)
    x3_in = jax.random.uniform(k3, (2, 3, 48, 48), dtype=jnp.float32)
    out3 = sa_loss(x3_in, tile_rows=16)
    jax.block_until_ready(out3)
    ref3 = _reference(x3_in)
    assert jnp.allclose(out3, ref3, rtol=1e-5, atol=1e-5), (out3, ref3)

    # 4) bf16 input, cast to f32 in-kernel, padded/masked tail
    x4_in = jax.random.uniform(k4, (2, 3, 20, 20), dtype=jnp.float32)
    x4_in = x4_in.astype(jnp.bfloat16)
    out4 = sa_loss(x4_in)
    jax.block_until_ready(out4)
    ref4 = _reference(x4_in)
    assert jnp.allclose(out4, ref4, rtol=1e-3, atol=1e-3), (out4, ref4)

    print("KERNEL_OK")
</pallas_src>

<mosaic_0001>
module attributes {stable_mosaic.version = 11 : i64} {
  func.func @kernel(%arg0: i32, %arg1: memref<2x3x1x1xf32, #tpu.memory_space<vmem>>, %arg2: memref<2x3x16x128xf32, #tpu.memory_space<vmem>>, %arg3: memref<1x8x128xf32, #tpu.memory_space<vmem>>) attributes {dimension_semantics = [#tpu.dimension_semantics<parallel>], iteration_bounds = array<i64: 1>, scalar_prefetch = 0 : i64, scratch_operands = 0 : i64, tpu.core_type = #tpu.core_type<tc>, window_params = [{pipeline_mode = #tpu.pipeline_mode<synchronous>, transform_indices = @transform_0, window_bounds = array<i64: 2, 3, 1, 1>}, {transform_indices = @transform_1, window_bounds = array<i64: 2, 3, 16, 128>}, {transform_indices = @transform_2, window_bounds = array<i64: 1, 8, 128>}]} {
    %c0 = arith.constant 0 : index
    %c0_0 = arith.constant 0 : index
    %c0_1 = arith.constant 0 : index
    %c0_2 = arith.constant 0 : index
    %0 = vector.load %arg2[%c0, %c0_0, %c0_1, %c0_2] : memref<2x3x16x128xf32, #tpu.memory_space<vmem>>, vector<2x3x16x128xf32>
    %c0_3 = arith.constant 0 : index
    %c0_4 = arith.constant 0 : index
    %c0_5 = arith.constant 0 : index
    %c0_6 = arith.constant 0 : index
    %1 = vector.load %arg1[%c0_3, %c0_4, %c0_5, %c0_6] : memref<2x3x1x1xf32, #tpu.memory_space<vmem>>, vector<2x3x1x1xf32>
    %2 = vector.broadcast %1 : vector<2x3x1x1xf32> to vector<2x3x16x128xf32>
    %3 = arith.subf %0, %2 : vector<2x3x16x128xf32>
    %4 = arith.mulf %3, %3 : vector<2x3x16x128xf32>
    %5 = vector.extract_strided_slice %4 {offsets = [0, 0, 0, 0], sizes = [2, 1, 16, 128], strides = [1, 1, 1, 1]} : vector<2x3x16x128xf32> to vector<2x1x16x128xf32>
    %6 = vector.shape_cast %5 : vector<2x1x16x128xf32> to vector<2x16x128xf32>
    %7 = vector.extract_strided_slice %4 {offsets = [0, 1, 0, 0], sizes = [2, 1, 16, 128], strides = [1, 1, 1, 1]} : vector<2x3x16x128xf32> to vector<2x1x16x128xf32>
    %8 = vector.shape_cast %7 : vector<2x1x16x128xf32> to vector<2x16x128xf32>
    %9 = arith.addf %6, %8 : vector<2x16x128xf32>
    %10 = vector.extract_strided_slice %4 {offsets = [0, 2, 0, 0], sizes = [2, 1, 16, 128], strides = [1, 1, 1, 1]} : vector<2x3x16x128xf32> to vector<2x1x16x128xf32>
    %11 = vector.shape_cast %10 : vector<2x1x16x128xf32> to vector<2x16x128xf32>
    %12 = arith.addf %9, %11 : vector<2x16x128xf32>
    %13 = math.sqrt %12 : vector<2x16x128xf32>
    %c0_i32 = arith.constant 0 : i32
    %14 = arith.cmpi ne, %arg0, %c0_i32 : i32
    %15 = arith.extui %14 : i1 to i32
    %c0_i32_7 = arith.constant 0 : i32
    %16 = arith.cmpi ne, %15, %c0_i32_7 : i32
    scf.if %16 {
      %20 = vector.shape_cast %13 : vector<2x16x128xf32> to vector<4x8x128xf32>
      %cst = arith.constant dense<0.000000e+00> : vector<8x128xf32>
      %21 = vector.multi_reduction <add>, %20, %cst [0] : vector<4x8x128xf32> to vector<8x128xf32>
      %22 = vector.shape_cast %21 : vector<8x128xf32> to vector<1x8x128xf32>
      %c0_10 = arith.constant 0 : index
      %c0_11 = arith.constant 0 : index
      %c0_12 = arith.constant 0 : index
      %23 = vector.load %arg3[%c0_10, %c0_11, %c0_12] : memref<1x8x128xf32, #tpu.memory_space<vmem>>, vector<1x8x128xf32>
      tpu.vector_store %arg3[%c0_10, %c0_11, %c0_12], %22 {strides = array<i32>} : memref<1x8x128xf32, #tpu.memory_space<vmem>>, vector<1x8x128xf32>,
    } else {
    }
    %c0_i32_8 = arith.constant 0 : i32
    %17 = arith.cmpi eq, %arg0, %c0_i32_8 : i32
    %18 = arith.extui %17 : i1 to i32
    %c0_i32_9 = arith.constant 0 : i32
    %19 = arith.cmpi ne, %18, %c0_i32_9 : i32
    scf.if %19 {
      %20 = tpu.iota {dimensions = array<i32: 1>} : vector<2x16x128xi32>
      %21 = tpu.iota {dimensions = array<i32: 2>} : vector<2x16x128xi32>
      %c16_i32 = arith.constant 16 : i32
      %22 = arith.muli %arg0, %c16_i32 : i32
      %23 = vector.broadcast %22 : i32 to vector<2x16x128xi32>
      %24 = arith.addi %23, %20 : vector<2x16x128xi32>
      %c128_i32 = arith.constant 128 : i32
      %25 = vector.broadcast %c128_i32 : i32 to vector<2x16x128xi32>
      %26 = arith.muli %24, %25 : vector<2x16x128xi32>
      %27 = arith.addi %26, %21 : vector<2x16x128xi32>
      %c256_i32 = arith.constant 256 : i32
      %28 = vector.broadcast %c256_i32 : i32 to vector<2x16x128xi32>
      %29 = arith.cmpi slt, %27, %28 : vector<2x16x128xi32>
      %cst = arith.constant 0.000000e+00 : f32
      %30 = vector.broadcast %cst : f32 to vector<2x16x128xf32>
      %31 = arith.select %29, %13, %30 : vector<2x16x128xi1>, vector<2x16x128xf32>
      %32 = vector.shape_cast %31 : vector<2x16x128xf32> to vector<4x8x128xf32>
      %cst_10 = arith.constant dense<0.000000e+00> : vector<8x128xf32>
      %33 = vector.multi_reduction <add>, %32, %cst_10 [0] : vector<4x8x128xf32> to vector<8x128xf32>
      %34 = vector.shape_cast %33 : vector<8x128xf32> to vector<1x8x128xf32>
      %c0_11 = arith.constant 0 : index
      %c0_12 = arith.constant 0 : index
      %c0_13 = arith.constant 0 : index
      %35 = vector.load %arg3[%c0_11, %c0_12, %c0_13] : memref<1x8x128xf32, #tpu.memory_space<vmem>>, vector<1x8x128xf32>
      tpu.vector_store %arg3[%c0_11, %c0_12, %c0_13], %34 {strides = array<i32>} : memref<1x8x128xf32, #tpu.memory_space<vmem>>, vector<1x8x128xf32>,
    } else {
    }
    return
  }
  func.func @transform_0(%arg0: i32) -> (i32, i32, i32, i32) {
    %c0_i32 = arith.constant 0 : i32
    %c0_i32_0 = arith.constant 0 : i32
    %c0_i32_1 = arith.constant 0 : i32
    %c0_i32_2 = arith.constant 0 : i32
    %c0_i32_3 = arith.constant 0 : i32
    return %c0_i32, %c0_i32_0, %c0_i32_1, %c0_i32_2 : i32, i32, i32, i32
  }
  func.func @transform_1(%arg0: i32) -> (i32, i32, i32, i32) {
    %c0_i32 = arith.constant 0 : i32
    %c0_i32_0 = arith.constant 0 : i32
    %c0_i32_1 = arith.constant 0 : i32
    %c0_i32_2 = arith.constant 0 : i32
    return %c0_i32, %c0_i32_0, %arg0, %c0_i32_1 : i32, i32, i32, i32
  }
  func.func @transform_2(%arg0: i32) -> (i32, i32, i32) {
    %c0_i32 = arith.constant 0 : i32
    %c0_i32_0 = arith.constant 0 : i32
    %c0_i32_1 = arith.constant 0 : i32
    return %arg0, %c0_i32, %c0_i32_0 : i32, i32, i32
  }
}

</mosaic_0001>

<bundles_post_ra>
// kernel: tpu_custom_call.1
= control target key start
LH: loop header
LB: loop body
LE: loop exit
PB: predicated region body
PF: predicated region fallthrough
CT: control target
= control target key end

     0   :  { %7 = vsyncpa [#allocation3], 0  ;;  %s343_s0 = inlined_call_operand.vmem [shape: f32[2,3,1,1], index: 0, kind: input, shape index: {}]   ;;  %s344_s1 = inlined_call_operand.hbm [shape: f32[2,3,16,128], index: 1, kind: input, shape index: {}]   ;;  %s345_s2 = inlined_call_operand.hbm [shape: f32[1,8,128], index: 2, kind: output, shape index: {}]  }
   0x1   :  { %8 = vsyncpa [#allocation4], 0  ;;  %s277_s9 = smov [#allocation2]   ;;  %s229_s13 = scalar_lea.hbm %s344_s1, 1536 }
   0x2   :  { %s16_s10 = sshll.u32 %s277_s9, 4  ;;  %p230_p0 = scmp.ne.s32.totalorder %s344_s1, %s229_s13  ;;  %s17_s10 = int_to_ptr.vmem [resolvable:$true] %s16_s10 }
   0x3   :  { %p233_p1 = scmp.lt.u32.totalorder %s229_s13, %s344_s1 }
   0x5   :  { %p235_p2 = pnand %p233_p1, %p230_p0 }
   0x7   :  { %238 = shalt.err (!%p235_p2)
}
   0x8   :  { %s239_s18 = scalar_lea.vmem %s17_s10, 1536  ;;  %p244_p4 = scmp.lt.s32.totalorder %s17_s10, %s17_s10 }
   0x9   :  { %p240_p3 = scmp.ne.s32.totalorder %s17_s10, %s239_s18  ;;  %p245_p5 = scmp.lt.s32.totalorder %s239_s18, %s239_s18 }
   0xb   :  { %p246_p6 = por %p245_p5, %p244_p4 }
   0xd   :  { %p247_p7 = pnand %p246_p6, %p240_p3 }
   0xf   :  { %250 = shalt.err (!%p247_p7)
}
  0x10   :  { %s278_s19 = smov 128   ;;  %s279_s20 = smov 8  }
  0x11   :  { %22 = dma.hbm_to_vmem [thread:$0]  %s344_s1, 1536, %s17_s10, [#allocation3], %s278_s19, %s278_s19, %s279_s20  }
  0x12   :  { %273 = dma.done.wait [#allocation3], 1536  }
  0x13   :  { %274 = vsyncadd [#allocation3], 4294965760  ;;  %v280_v0 = vmov 0   ;;  %v210_v1 = vld [vmem:[%s343_s0 + $0x2] ss:$0 sm:$0xff]  ;;  %v27_v10 = vld [vmem:[#allocation2 + $0x8] sm:$0xff]  ;;  %v170_v20 = vlaneseq }
  0x14   :  { %220 = vset.pattern.permute.xlu1 %v280_v0  ;;  %219 = vset.pattern.permute.xlu0 %v280_v0  ;;  %v208_v2 = vld [vmem:[%s343_s0] ss:$0 sm:$0xff]  ;;  %v211_v3 = vld [vmem:[%s343_s0 + $0x3] ss:$0 sm:$0xff]  ;;  %v209_v4 = vld [vmem:[%s343_s0 + $0x1] ss:$0 sm:$0xff] }
  0x15   :  { %83 = vperm.xlu1 %220, %v210_v1   ;;  %75 = vperm.xlu0 %219, %v208_v2   ;;  %v213_v5 = vld [vmem:[%s343_s0 + $0x5] ss:$0 sm:$0xff]  ;;  %v212_v6 = vld [vmem:[%s343_s0 + $0x4] ss:$0 sm:$0xff]  ;;  %v31_v12 = vld [vmem:[#allocation2 + $0x28] sm:$0xff]  ;;  %v171_v39 = vshrl.u32 %v170_v20, 7 }
  0x16   :  { %v26_v9 = vld [vmem:[#allocation2] sm:$0xff]  ;;  %v28_v13 = vld [vmem:[#allocation2 + $0x10] sm:$0xff]  ;;  %v29_v14 = vld [vmem:[#allocation2 + $0x18] sm:$0xff]  ;;  %v174_v60 = vand.u32 127, %v170_v20  ;;  %s281_s0 = smov [#allocation5]  }
  0x17   :  { %v30_v11 = vld [vmem:[#allocation2 + $0x20] sm:$0xff]  ;;  %v32_v22 = vld [vmem:[#allocation2 + $0x30] sm:$0xff]  ;;  %v33_v23 = vld [vmem:[#allocation2 + $0x38] sm:$0xff]  ;;  %v172_v54 = vadd.s32 8, %v171_v39  ;;  %v179_v61 = vmul.u32 128, %v171_v39  ;;  %s199_s6 = sshll.u32 %s281_s0, 4  ;;  %s200_s6 = int_to_ptr.vmem [resolvable:$true] %s199_s6 }
  0x18   :  { %v36_v26 = vld [vmem:[#allocation2 + $0x50] sm:$0xff]  ;;  %v37_v31 = vld [vmem:[#allocation2 + $0x58] sm:$0xff]  ;;  %v34_v32 = vld [vmem:[#allocation2 + $0x40] sm:$0xff]  ;;  %s251_s7 = scalar_lea.vmem %s200_s6, 128  ;;  %p256_p9 = scmp.lt.s32.totalorder %s200_s6, %s200_s6 }
  0x19   :  { %87 = vperm.xlu1 %220, %v211_v3   ;;  %79 = vperm.xlu0 %219, %v209_v4   ;;  %v35_v33 = vld [vmem:[#allocation2 + $0x48] sm:$0xff]  ;;  %v180_v62 = vmul.u32 128, %v172_v54  ;;  %v181_v63 = vadd.s32 %v179_v61, %v174_v60  ;;  %p252_p8 = scmp.ne.s32.totalorder %s200_s6, %s251_s7  ;;  %p257_p10 = scmp.lt.s32.totalorder %s251_s7, %s251_s7 }
  0x1b   :  { %v182_v0 = vadd.s32 %v180_v62, %v174_v60  ;;  %vm183_vm0 = vcmp.lt.s32.totalorder %v181_v63, 256  ;;  %p258_p11 = por %p257_p10, %p256_p9 }
  0x1d   :  { %95 = vperm.xlu1 %220, %v213_v5   ;;  %91 = vperm.xlu0 %219, %v212_v6   ;;  %vm184_vm2 = vcmp.lt.s32.totalorder %v182_v0, 256  ;;  %p259_p12 = pnand %p258_p11, %p252_p8 }
  0x94   :  { %v84_v7 = vpop.permute.xlu1 %83  ;;  %v76_v8 = vpop.permute.xlu0 %75 }
  0x95   :  { %v98_v15 = vsub.f32 %v26_v9, %v76_v8  ;;  %v99_v16 = vsub.f32 %v27_v10, %v76_v8  ;;  %v102_v17 = vsub.f32 %v30_v11, %v84_v7  ;;  %v103_v21 = vsub.f32 %v31_v12, %v84_v7 }
  0x97   :  { %v110_v27 = vmul.f32 %v98_v15, %v98_v15  ;;  %v111_v28 = vmul.f32 %v99_v16, %v99_v16  ;;  %v114_v34 = vmul.f32 %v102_v17, %v102_v17  ;;  %v115_v40 = vmul.f32 %v103_v21, %v103_v21 }
  0x98   :  { %v88_v18 = vpop.permute.xlu1 %87  ;;  %v80_v19 = vpop.permute.xlu0 %79 }
  0x99   :  { %v100_v24 = vsub.f32 %v28_v13, %v80_v19  ;;  %v101_v25 = vsub.f32 %v29_v14, %v80_v19  ;;  %v104_v35 = vsub.f32 %v32_v22, %v88_v18  ;;  %v105_v36 = vsub.f32 %v33_v23, %v88_v18 }
  0x9b   :  { %v112_v29 = vmul.f32 %v100_v24, %v100_v24  ;;  %v113_v30 = vmul.f32 %v101_v25, %v101_v25  ;;  %v116_v49 = vmul.f32 %v104_v35, %v104_v35  ;;  %v117_v50 = vmul.f32 %v105_v36, %v105_v36 }
  0x9c   :  { %v96_v37 = vpop.permute.xlu1 %95  ;;  %v92_v38 = vpop.permute.xlu0 %91 }
  0x9d   :  { %v122_v41 = vadd.f32 %v112_v29, %v110_v27  ;;  %v123_v42 = vadd.f32 %v113_v30, %v111_v28  ;;  %v108_v43 = vsub.f32 %v36_v26, %v96_v37  ;;  %v109_v44 = vsub.f32 %v37_v31, %v96_v37 }
  0x9e   :  { %v106_v45 = vsub.f32 %v34_v32, %v92_v38  ;;  %v107_v46 = vsub.f32 %v35_v33, %v92_v38 }
  0x9f   :  { %v126_v47 = vadd.f32 %v122_v41, %v114_v34  ;;  %v127_v48 = vadd.f32 %v123_v42, %v115_v40  ;;  %v120_v53 = vmul.f32 %v108_v43, %v108_v43  ;;  %v121_v55 = vmul.f32 %v109_v44, %v109_v44 }
  0xa0   :  { %v118_v51 = vmul.f32 %v106_v45, %v106_v45  ;;  %v119_v52 = vmul.f32 %v107_v46, %v107_v46 }
  0xa1   :  { %221 = vrsqrt.f32 %v126_v47  ;;  %vm132_vm1 = vcmp.eq.f32.partialorder %v126_v47, inf  ;;  %v135_v4 = vand.u32 2147483648, %v126_v47  ;;  %vm134_vm3 = vcmp.eq.f32.partialorder %v126_v47, 0.0 }
  0xa2   :  { %223 = vrsqrt.f32 %v127_v48  ;;  %v124_v56 = vadd.f32 %v118_v51, %v116_v49  ;;  %v125_v57 = vadd.f32 %v119_v52, %v117_v50  ;;  %vm139_vm4 = vcmp.eq.f32.partialorder %v127_v48, inf }
  0xa3   :  { %v142_v7 = vand.u32 2147483648, %v127_v48  ;;  %vm141_vm5 = vcmp.eq.f32.partialorder %v127_v48, 0.0 }
  0xa4   :  { %v128_v58 = vadd.f32 %v124_v56, %v120_v53  ;;  %v129_v59 = vadd.f32 %v125_v57, %v121_v55 }
  0xa6   :  { %225 = vrsqrt.f32 %v128_v58  ;;  %vm146_vm6 = vcmp.eq.f32.partialorder %v128_v58, inf  ;;  %v149_v16 = vand.u32 2147483648, %v128_v58  ;;  %vm148_vm7 = vcmp.eq.f32.partialorder %v128_v58, 0.0 }
  0xa7   :  { %227 = vrsqrt.f32 %v129_v59  ;;  %vm153_vm8 = vcmp.eq.f32.partialorder %v129_v59, inf  ;;  %v156_v19 = vand.u32 2147483648, %v129_v59  ;;  %vm155_vm9 = vcmp.eq.f32.partialorder %v129_v59, 0.0 }
  0xab   :  { %v222_v1 = vpop.eup %221 }
  0xac   :  { %v224_v2 = vpop.eup %223  ;;  %v131_v3 = vmul.f32 %v222_v1, %v126_v47 }
  0xad   :  { %v138_v5 = vmul.f32 %v224_v2, %v127_v48 }
  0xae   :  { %v133_v6 = vsel %vm132_vm1, %v126_v47, %v131_v3 }
  0xaf   :  { %v136_v8 = vsel %vm134_vm3, %v135_v4, %v133_v6  ;;  %v140_v9 = vsel %vm139_vm4, %v127_v48, %v138_v5 }
  0xb0   :  { %v226_v10 = vpop.eup %225  ;;  %v143_v11 = vsel %vm141_vm5, %v142_v7, %v140_v9  ;;  %v185_v14 = vsel %vm183_vm0, %v136_v8, 0.0 }
  0xb1   :  { %v228_v12 = vpop.eup %227  ;;  %v145_v13 = vmul.f32 %v226_v10, %v128_v58  ;;  %v186_v15 = vsel %vm184_vm2, %v143_v11, 0.0 }
  0xb2   :  { %v152_v17 = vmul.f32 %v228_v12, %v129_v59  ;;  %v189_v22 = vadd.f32 %v186_v15, %v185_v14 }
  0xb3   :  { %v147_v18 = vsel %vm146_vm6, %v128_v58, %v145_v13 }
  0xb4   :  { %v150_v20 = vsel %vm148_vm7, %v149_v16, %v147_v18  ;;  %v154_v21 = vsel %vm153_vm8, %v129_v59, %v152_v17 }
  0xb5   :  { %v157_v23 = vsel %vm155_vm9, %v156_v19, %v154_v21  ;;  %v187_v24 = vsel %vm183_vm0, %v150_v20, 0.0 }
  0xb6   :  { %v190_v25 = vadd.f32 %v189_v22, %v187_v24  ;;  %v188_v26 = vsel %vm184_vm2, %v157_v23, 0.0 }
  0xb8   :  { %v191_v27 = vadd.f32 %v190_v25, %v188_v26 }
  0xba   :  { %192 = vst [vmem:[#allocation5] sm:$0xff] %v191_v27 }
  0xbb   :  { %262 = shalt.err (!%p259_p12)
}
  0xbc   :  { %s263_s10 = scalar_lea.hbm %s345_s2, 128 }
  0xbd   :  { %p264_p13 = scmp.ne.s32.totalorder %s345_s2, %s263_s10  ;;  %p267_p0 = scmp.lt.u32.totalorder %s263_s10, %s345_s2 }
  0xbf   :  { %p269_p1 = pnand %p267_p0, %p264_p13 }
  0xc1   :  { %272 = shalt.err (!%p269_p1)
}
  0xc2   :  { %202 = dma.vmem_to_hbm [thread:$0]  %s200_s6, 128, %s345_s2, [#allocation4]  }
  0xc3   :  { %275 = dma.done.wait [#allocation4], 128  }
  0xc4   :  { %276 = vsyncadd [#allocation4], 4294967168 }
  0xc5   :  { %206 = vsyncpa [#allocation3], 1 }
  0xc6   :  { %207 = vsyncpa [#allocation4], 1 }

</bundles_post_ra>
